<compile_context>
chip_gen: v5e
topology: v5e:2x2
jax: 0.10.0
libtpu: 0.0.40
codegen_flags: <defaults>
</compile_context>

<pallas_src>
import math

import jax
import jax.numpy as jnp
from jax import lax
from jax.experimental import pallas as pl
from jax.experimental.pallas import tpu as pltpu


_HAS_BUFFERED = hasattr(pl, "Buffered")


def _round_up(x, m):
    return ((x + m - 1) // m) * m


def _vmem_capacity_bytes():
    """Physical VMEM per TensorCore; conservative (v7x) fallback if unknown."""
    try:
        info = pltpu.get_tpu_info()
        cap = int(getattr(info, "vmem_capacity_bytes", 0) or 0)
        if cap > 0:
            return cap
    except Exception:
        pass
    return 64 << 20


def choose_tiles(M, dim_in, dim_out, itemsize, vmem_cap=None):
    """Pick (tm, tn, tk): avoid wrapper pad/slice copies when the problem is
    tile-friendly and keep the (worst-case double-buffered) working set inside
    the per-generation VMEM budget."""
    if vmem_cap is None:
        vmem_cap = _vmem_capacity_bytes()
    budget = int(0.75 * vmem_cap)
    big_vmem = vmem_cap >= (96 << 20)        # v5e / v6e (128 MiB) vs v7x (64 MiB)

    cap_tm = 256
    cap_tn = 1024 if big_vmem else 512

    # ---- tm: prefer a divisor of M (no HBM pad copy of x, no output slice).
    M = max(int(M), 1)
    if M <= cap_tm:
        tm = M                                # full-dim block, always legal
    else:
        tm = 0
        for cand in range(cap_tm, 0, -16):    # multiple of 16: bf16-safe sublanes
            if M % cand == 0:
                tm = cand
                break
        if tm == 0:
            tm = cap_tm                       # ragged M -> wrapper pads

    # ---- tn: lane-dense multiple of 128; prefer a divisor of dim_out.
    if dim_out % 128 == 0:
        tn = 128
        for cand in range(min(cap_tn, dim_out), 0, -128):
            if dim_out % cand == 0:
                tn = cand
                break
    else:
        tn = min(cap_tn, _round_up(dim_out, 128))   # ragged N -> wrapper pads

    # ---- tk: keep the double-buffered weight tile inside ~1/3 of the budget.
    w_budget = budget // 3
    tk = dim_in
    if dim_in % 128 == 0 and 2 * dim_in * 2 * tn * itemsize > w_budget:
        tk = 128
        cand = dim_in - 128
        while cand >= 128:
            if dim_in % cand == 0 and 2 * cand * 2 * tn * itemsize <= w_budget:
                tk = cand
                break
            cand -= 128
    # TODO(synk): a very large dim_in that is not a multiple of 128 stays
    # untiled along K (rare for transformer/diffusion dims).

    return tm, tn, tk


def _geglu_kernel(x_ref, w_ref, b_ref, out_ref, acc_ref):
    # x_ref:  (tm, tk)           native dtype (f32 or bf16)
    # w_ref:  (tk, 2*tn)         packed [Wv_j | Wg_j] tile, native dtype
    # b_ref:  (1, 2*tn)          packed [bv_j | bg_j] tile, f32
    # out_ref:(tm, tn)
    # acc_ref:(tm, 2*tn) f32     reduction accumulator across the K grid axis
    k = pl.program_id(2)

    @pl.when(k == 0)
    def _():
        acc_ref[...] = jnp.zeros_like(acc_ref)

    # Single fused MXU matmul per step, native operand dtype, f32 accumulation.
    acc_ref[...] += jnp.dot(x_ref[...], w_ref[...],
                            preferred_element_type=jnp.float32)

    @pl.when(k == pl.num_programs(2) - 1)
    def _():
        tn = out_ref.shape[-1]
        y = acc_ref[...] + b_ref[...]          # bias / epilogue in f32
        v = y[:, :tn]                          # static, lane-aligned split
        g = y[:, tn:]
        # exact GELU (erf) -- matches torch.nn.functional.gelu default
        gelu_g = 0.5 * g * (1.0 + lax.erf(g * jnp.float32(0.7071067811865476)))
        out_ref[...] = (v * gelu_g).astype(out_ref.dtype)


def pack_geglu_params(w_proj, b_proj, *, tn):
    """One-time packing of PyTorch nn.Linear params for the kernel.

    w_proj: (2*dim_out, dim_in)  PyTorch weight layout
    b_proj: (2*dim_out,)         PyTorch bias
    Returns:
      w_packed: (dim_in, nN * 2*tn)  -- per N-tile layout [Wv_j | Wg_j]
      b_packed: (1, nN * 2*tn) f32   -- per N-tile layout [bv_j | bg_j]
    """
    two_dout, dim_in = w_proj.shape
    dim_out = two_dout // 2
    Np = _round_up(dim_out, tn)
    nN = Np // tn
    pad_n = Np - dim_out

    wv = jnp.pad(jnp.transpose(w_proj[:dim_out, :]), ((0, 0), (0, pad_n)))
    wg = jnp.pad(jnp.transpose(w_proj[dim_out:, :]), ((0, 0), (0, pad_n)))
    w_packed = jnp.stack(
        [wv.reshape(dim_in, nN, tn), wg.reshape(dim_in, nN, tn)], axis=2
    ).reshape(dim_in, nN * 2 * tn)

    bv = jnp.pad(b_proj[:dim_out], (0, pad_n)).astype(jnp.float32)
    bg = jnp.pad(b_proj[dim_out:], (0, pad_n)).astype(jnp.float32)
    b_packed = jnp.stack(
        [bv.reshape(nN, tn), bg.reshape(nN, tn)], axis=1
    ).reshape(1, nN * 2 * tn)

    return w_packed, b_packed


def _build_geglu_call(Mp, Np, dim_in, tm, tn, tk, out_dtype,
                      single_buffer_w, vmem_limit, cost):
    nN, nM, nK = Np // tn, Mp // tm, dim_in // tk

    w_kwargs = {}
    b_kwargs = {}
    if single_buffer_w:
        # Weight / bias block index only changes on the slow N axis:
        # single-buffer them to halve the dominant VMEM consumer.
        w_kwargs = dict(pipeline_mode=pl.Buffered(1))
        b_kwargs = dict(pipeline_mode=pl.Buffered(1))

    return pl.pallas_call(
        _geglu_kernel,
        out_shape=jax.ShapeDtypeStruct((Mp, Np), out_dtype),
        grid_spec=pltpu.PrefetchScalarGridSpec(
            num_scalar_prefetch=0,
            # N slowest (weight tile DMA'd once per N tile when nK == 1 and
            # reused across all M tiles); K innermost is the reduction axis.
            grid=(nN, nM, nK),
            in_specs=[
                pl.BlockSpec((tm, tk), lambda j, i, k: (i, k)),
                pl.BlockSpec((tk, 2 * tn), lambda j, i, k: (k, j), **w_kwargs),
                pl.BlockSpec((1, 2 * tn), lambda j, i, k: (0, j), **b_kwargs),
            ],
            out_specs=pl.BlockSpec((tm, tn), lambda j, i, k: (i, j)),
            scratch_shapes=[pltpu.VMEM((tm, 2 * tn), jnp.float32)],
        ),
        compiler_params=pltpu.CompilerParams(
            dimension_semantics=("parallel", "parallel", "arbitrary"),
            vmem_limit_bytes=vmem_limit,
        ),
        cost_estimate=cost,
    )


def geglu(x, w_packed, b_packed, dim_out, *, tm, tn, tk):
    """GEGLU forward with pre-packed params. x: (..., dim_in) -> (..., dim_out)."""
    dim_in = x.shape[-1]
    lead = x.shape[:-1]
    M = math.prod(lead) if lead else 1
    x2d = x.reshape(M, dim_in)

    assert dim_in % tk == 0, "tk must divide dim_in"
    Np = b_packed.shape[-1] // 2
    assert Np % tn == 0 and w_packed.shape == (dim_in, 2 * Np)

    Mp = _round_up(M, tm)
    if Mp != M:                               # pad only when M is ragged
        x2d = jnp.pad(x2d, ((0, Mp - M), (0, 0)))

    nN, nM, nK = Np // tn, Mp // tm, dim_in // tk
    itemsize = x2d.dtype.itemsize
    w_itemsize = jnp.dtype(w_packed.dtype).itemsize

    # Explicit scoped-VMEM budget: worst-case double-buffered tiles plus the
    # f32 accumulator and GELU-epilogue temporaries, generation-aware cap.
    need = (
        2 * tm * tk * itemsize                # x tile (double buffered)
        + 2 * tk * 2 * tn * w_itemsize        # weight tile (worst case 2 bufs)
        + 2 * 2 * tn * 4                      # bias tile (f32)
        + 2 * tm * tn * itemsize              # output tile (double buffered)
        + tm * 2 * tn * 4                     # f32 accumulator scratch
        + 6 * tm * tn * 4                     # y / v / g / erf temporaries
        + (2 << 20)                           # misc headroom
    )
    vmem_cap = _vmem_capacity_bytes()
    vmem_limit = int(min(max(need, 32 << 20), 0.75 * vmem_cap))

    cost = pl.CostEstimate(
        flops=int(4 * Mp * dim_in * Np),
        transcendentals=int(Mp * Np),
        bytes_accessed=int(
            nN * Mp * dim_in * itemsize                       # x re-read per N tile
            + (nM if nK > 1 else 1) * dim_in * 2 * Np * w_itemsize
            + 2 * Np * 4
            + Mp * Np * itemsize
        ),
    )

    # Single-buffer weights/bias only when they are invariant along both inner
    # grid axes (nK == 1) and the saving isn't paid back by an exposed DMA on
    # every step (nM >= 2).
    single_buffer_w = _HAS_BUFFERED and nK == 1 and nM >= 2

    def run(single_buffer):
        call = _build_geglu_call(Mp, Np, dim_in, tm, tn, tk, x2d.dtype,
                                 single_buffer, vmem_limit, cost)
        return call(x2d, w_packed, b_packed)

    if single_buffer_w:
        try:
            out2d = run(True)
        except Exception:                     # Buffered(1) unsupported -> default
            out2d = run(False)
    else:
        out2d = run(False)

    if Mp != M or Np != dim_out:
        out2d = out2d[:M, :dim_out]
    return out2d.reshape(*lead, dim_out)


def geglu_ref(x, w_proj, b_proj):
    """Pure-JAX reference matching the PyTorch module."""
    y = jnp.einsum("...i,oi->...o", x, w_proj) + b_proj
    dim_out = w_proj.shape[0] // 2
    v, g = y[..., :dim_out], y[..., dim_out:]
    return v * (0.5 * g * (1.0 + lax.erf(g / jnp.sqrt(2.0))))


if __name__ == "__main__":
    def run_case(B, S, dim_in, dim_out, dtype, atol, rtol, key):
        kx, kw, kb = jax.random.split(key, 3)
        x = jax.random.normal(kx, (B, S, dim_in), dtype=jnp.float32)
        bound = 1.0 / math.sqrt(dim_in)
        w_proj = jax.random.uniform(kw, (2 * dim_out, dim_in),
                                    minval=-bound, maxval=bound, dtype=jnp.float32)
        b_proj = jax.random.uniform(kb, (2 * dim_out,),
                                    minval=-bound, maxval=bound, dtype=jnp.float32)

        ref = geglu_ref(x, w_proj, b_proj)

        M = B * S
        tm, tn, tk = choose_tiles(M, dim_in, dim_out, jnp.dtype(dtype).itemsize)
        # Parameter packing is hoisted out of the per-call path (done once).
        w_packed, b_packed = pack_geglu_params(w_proj.astype(dtype), b_proj, tn=tn)

        out = geglu(x.astype(dtype), w_packed, b_packed, dim_out,
                    tm=tm, tn=tn, tk=tk)
        out = jax.block_until_ready(out)
        assert out.shape == (B, S, dim_out)
        assert out.dtype == jnp.dtype(dtype)
        assert jnp.allclose(out.astype(jnp.float32), ref, atol=atol, rtol=rtol), (
            f"mismatch ({dtype}, B={B}, S={S}, dim_in={dim_in}, dim_out={dim_out})"
        )

    key = jax.random.PRNGKey(0)
    k1, k2, k3 = jax.random.split(key, 3)

    # Small attention-like shape, f32 (exercises the ragged-dim_out pad path).
    run_case(2, 8, 32, 32, jnp.float32, 2e-5, 2e-5, k1)
    # Same shape, bf16 operands feeding the MXU, f32 accumulation.
    run_case(2, 8, 32, 32, jnp.bfloat16, 3e-2, 5e-2, k2)
    # Multi-M-tile shape (N-outer weight reuse + single-buffered weight tiles).
    run_case(2, 256, 64, 64, jnp.bfloat16, 5e-2, 5e-2, k3)

    print("KERNEL_OK")
</pallas_src>

<mosaic_0001>
module attributes {stable_mosaic.version = 11 : i64} {
  func.func @_geglu_kernel(%arg0: i32, %arg1: i32, %arg2: i32, %arg3: memref<16x32xf32, #tpu.memory_space<vmem>>, %arg4: memref<32x256xf32, #tpu.memory_space<vmem>>, %arg5: memref<1x256xf32, #tpu.memory_space<vmem>>, %arg6: memref<16x128xf32, #tpu.memory_space<vmem>>, %arg7: memref<16x256xf32, #tpu.memory_space<vmem>>) attributes {dimension_semantics = [#tpu.dimension_semantics<parallel>, #tpu.dimension_semantics<parallel>, #tpu.dimension_semantics<arbitrary>], iteration_bounds = array<i64: 1, 1, 1>, scalar_prefetch = 0 : i64, scratch_operands = 1 : i64, tpu.core_type = #tpu.core_type<tc>, window_params = [{transform_indices = @transform_0, window_bounds = array<i64: 16, 32>}, {transform_indices = @transform_1, window_bounds = array<i64: 32, 256>}, {transform_indices = @transform_2, window_bounds = array<i64: 1, 256>}, {transform_indices = @transform_3, window_bounds = array<i64: 16, 128>}]} {
    %c0_i32 = arith.constant 0 : i32
    %0 = arith.cmpi eq, %arg2, %c0_i32 : i32
    %1 = arith.extui %0 : i1 to i32
    %c0_i32_0 = arith.constant 0 : i32
    %2 = arith.cmpi ne, %1, %c0_i32_0 : i32
    scf.if %2 {
      %cst_10 = arith.constant 0.000000e+00 : f32
      %12 = vector.broadcast %cst_10 : f32 to vector<16x256xf32>
      %c0_11 = arith.constant 0 : index
      %c0_12 = arith.constant 0 : index
      %13 = vector.load %arg7[%c0_11, %c0_12] : memref<16x256xf32, #tpu.memory_space<vmem>>, vector<16x256xf32>
      tpu.vector_store %arg7[%c0_11, %c0_12], %12 {strides = array<i32>} : memref<16x256xf32, #tpu.memory_space<vmem>>, vector<16x256xf32>,
    } else {
    }
    %c0 = arith.constant 0 : index
    %c0_1 = arith.constant 0 : index
    %3 = vector.load %arg7[%c0, %c0_1] : memref<16x256xf32, #tpu.memory_space<vmem>>, vector<16x256xf32>
    %c0_2 = arith.constant 0 : index
    %c0_3 = arith.constant 0 : index
    %4 = vector.load %arg3[%c0_2, %c0_3] : memref<16x32xf32, #tpu.memory_space<vmem>>, vector<16x32xf32>
    %c0_4 = arith.constant 0 : index
    %c0_5 = arith.constant 0 : index
    %5 = vector.load %arg4[%c0_4, %c0_5] : memref<32x256xf32, #tpu.memory_space<vmem>>, vector<32x256xf32>
    %cst = arith.constant dense<0.000000e+00> : vector<16x256xf32>
    %6 = tpu.matmul %4, %5, %cst {dimension_numbers = #tpu.dot_dimension_numbers<[1], [0], [0], [1], [0, 0, 1, 1], [], []>} : vector<16x32xf32>, vector<32x256xf32>, vector<16x256xf32> -> vector<16x256xf32>
    %7 = arith.addf %3, %6 : vector<16x256xf32>
    %c0_6 = arith.constant 0 : index
    %c0_7 = arith.constant 0 : index
    %8 = vector.load %arg7[%c0_6, %c0_7] : memref<16x256xf32, #tpu.memory_space<vmem>>, vector<16x256xf32>
    tpu.vector_store %arg7[%c0_6, %c0_7], %7 {strides = array<i32>} : memref<16x256xf32, #tpu.memory_space<vmem>>, vector<16x256xf32>,
    %c0_i32_8 = arith.constant 0 : i32
    %9 = arith.cmpi eq, %arg2, %c0_i32_8 : i32
    %10 = arith.extui %9 : i1 to i32
    %c0_i32_9 = arith.constant 0 : i32
    %11 = arith.cmpi ne, %10, %c0_i32_9 : i32
    scf.if %11 {
      %c0_10 = arith.constant 0 : index
      %c0_11 = arith.constant 0 : index
      %12 = vector.load %arg7[%c0_10, %c0_11] : memref<16x256xf32, #tpu.memory_space<vmem>>, vector<16x256xf32>
      %c0_12 = arith.constant 0 : index
      %c0_13 = arith.constant 0 : index
      %13 = vector.load %arg5[%c0_12, %c0_13] : memref<1x256xf32, #tpu.memory_space<vmem>>, vector<1x256xf32>
      %14 = vector.broadcast %13 : vector<1x256xf32> to vector<16x256xf32>
      %15 = arith.addf %12, %14 : vector<16x256xf32>
      %16 = vector.extract_strided_slice %15 {offsets = [0, 0], sizes = [16, 128], strides = [1, 1]} : vector<16x256xf32> to vector<16x128xf32>
      %17 = vector.extract_strided_slice %15 {offsets = [0, 128], sizes = [16, 128], strides = [1, 1]} : vector<16x256xf32> to vector<16x128xf32>
      %cst_14 = arith.constant 5.000000e-01 : f32
      %18 = vector.broadcast %cst_14 : f32 to vector<16x128xf32>
      %19 = arith.mulf %18, %17 : vector<16x128xf32>
      %cst_15 = arith.constant 0.707106769 : f32
      %20 = vector.broadcast %cst_15 : f32 to vector<16x128xf32>
      %21 = arith.mulf %17, %20 : vector<16x128xf32>
      %22 = math.erf %21 : vector<16x128xf32>
      %cst_16 = arith.constant 1.000000e+00 : f32
      %23 = vector.broadcast %cst_16 : f32 to vector<16x128xf32>
      %24 = arith.addf %23, %22 : vector<16x128xf32>
      %25 = arith.mulf %19, %24 : vector<16x128xf32>
      %26 = arith.mulf %16, %25 : vector<16x128xf32>
      %c0_17 = arith.constant 0 : index
      %c0_18 = arith.constant 0 : index
      %27 = vector.load %arg6[%c0_17, %c0_18] : memref<16x128xf32, #tpu.memory_space<vmem>>, vector<16x128xf32>
      tpu.vector_store %arg6[%c0_17, %c0_18], %26 {strides = array<i32>} : memref<16x128xf32, #tpu.memory_space<vmem>>, vector<16x128xf32>,
    } else {
    }
    return
  }
  func.func @transform_0(%arg0: i32, %arg1: i32, %arg2: i32) -> (i32, i32) {
    %c0_i32 = arith.constant 0 : i32
    return %arg1, %arg2 : i32, i32
  }
  func.func @transform_1(%arg0: i32, %arg1: i32, %arg2: i32) -> (i32, i32) {
    %c0_i32 = arith.constant 0 : i32
    return %arg2, %arg0 : i32, i32
  }
  func.func @transform_2(%arg0: i32, %arg1: i32, %arg2: i32) -> (i32, i32) {
    %c0_i32 = arith.constant 0 : i32
    %c0_i32_0 = arith.constant 0 : i32
    return %c0_i32, %arg0 : i32, i32
  }
  func.func @transform_3(%arg0: i32, %arg1: i32, %arg2: i32) -> (i32, i32) {
    %c0_i32 = arith.constant 0 : i32
    return %arg1, %arg0 : i32, i32
  }
}

</mosaic_0001>

<bundles_post_ra>
// kernel: tpu_custom_call.1
= control target key start
LH: loop header
LB: loop body
LE: loop exit
PB: predicated region body
PF: predicated region fallthrough
CT: control target
= control target key end

     0   :  { %8 = vsyncpa [#allocation4], 0  ;;  %s463_s0 = inlined_call_operand.hbm [shape: f32[16,32], index: 0, kind: input, shape index: {}]   ;;  %s464_s1 = inlined_call_operand.hbm [shape: f32[32,256], index: 1, kind: input, shape index: {}]   ;;  %s465_s2 = inlined_call_operand.hbm [shape: f32[1,256], index: 2, kind: input, shape index: {}]   ;;  %s466_s3 = inlined_call_operand.hbm [shape: f32[16,128], index: 3, kind: output, shape index: {}]  }
   0x1   :  { %9 = vsyncpa [#allocation7], 0  ;;  %s28_s14 = sshll.u32 %s464_s1, 4  ;;  %s29_s14 = int_to_ptr.hbm [resolvable:$true] %s28_s14 }
   0x2   :  { %10 = vsyncpa [#allocation5], 0  ;;  %s400_s15 = smov [#allocation6]   ;;  %s15_s19 = sshll.u32 %s463_s0, 4  ;;  %s16_s19 = int_to_ptr.hbm [resolvable:$true] %s15_s19 }
   0x3   :  { %s30_s16 = sshll.u32 %s400_s15, 4  ;;  %s401_s20 = smov 256   ;;  %s31_s16 = int_to_ptr.vmem [resolvable:$true] %s30_s16 }
   0x4   :  { %s402_s21 = smov 16   ;;  %s403_s22 = smov [#allocation3]  }
   0x5   :  { %36 = dma.hbm_to_vmem [thread:$0]  %s29_s14, 1024, %s31_s16, [#allocation7], %s401_s20, %s401_s20, %s402_s21  }
   0x6   :  { %s17_s23 = sshll.u32 %s403_s22, 4  ;;  %s404_s24 = smov 128   ;;  %s18_s23 = int_to_ptr.vmem [resolvable:$true] %s17_s23 }
   0x7   :  { %s405_s25 = smov 8   ;;  %s42_s27 = sshll.u32 %s465_s2, 4  ;;  %s43_s27 = int_to_ptr.hbm [resolvable:$true] %s42_s27 }
   0x8   :  { %23 = dma.hbm_to_vmem [thread:$0]  %s16_s19, 256, %s18_s23, [#allocation4], %s404_s24, %s404_s24, %s405_s25  }
   0x9   :  { %s406_s28 = smov [#allocation8]  }
   0xa   :  { %s44_s0 = sshll.u32 %s406_s28, 4  ;;  %s45_s0 = int_to_ptr.vmem [resolvable:$true] %s44_s0 }
   0xb   :  { %47 = dma.hbm_to_vmem [thread:$0]  %s43_s27, 32, %s45_s0, [#allocation7]  }
   0xc   :  { %394 = dma.done.wait [#allocation4], 256  }
   0xd   :  { %395 = vsyncadd [#allocation4], 4294967040 }
   0xe   :  { %396 = dma.done.wait [#allocation7], 1056  }
   0xf   :  { %397 = vsyncadd [#allocation7], 4294966240  ;;  %v81_v0 = vld [vmem:[#allocation6 + $0x38] sm:$0xff]  ;;  %v79_v1 = vld [vmem:[#allocation6 + $0x28] sm:$0xff]  ;;  %vm82_vm0 = vcmask 261120   ;;  %s407_s2 = smov [#allocation9]  }
  0x10   :  { %124 = vmatpush.msra.mxu1 %v81_v0  ;;  %282 = vmatpush.msra.mxu3 %v81_v0  ;;  %v77_v2 = vld [vmem:[#allocation6 + $0x18] sm:$0xff]  ;;  %v80_v3 = vld [vmem:[#allocation6 + $0x30] sm:$0xff]  ;;  %v78_v4 = vld [vmem:[#allocation6 + $0x20] sm:$0xff]  ;;  %s256_s29 = sshll.u32 %s407_s2, 4  ;;  %s258_s5 = sshll.u32 %s466_s3, 4  ;;  %s257_s29 = int_to_ptr.vmem [resolvable:$true] %s256_s29  ;;  %s259_s5 = int_to_ptr.hbm [resolvable:$true] %s258_s5 }
  0x11   :  { %v75_v5 = vld [vmem:[#allocation6 + $0x8] sm:$0xff]  ;;  %101 = vmatpush.msra.mxu0 %v80_v3  ;;  %278 = vmatpush.msra.mxu2 %v80_v3  ;;  %v72_v6 = vld [vmem:[#allocation3] sm:$0xff]  ;;  %v73_v7 = vld [vmem:[#allocation3 + $0x8] sm:$0xff] }
  0x12   :  { %125 = vmatpush.msra.mxu1 %v79_v1  ;;  %283 = vmatpush.msra.mxu3 %v79_v1  ;;  %v76_v8 = vld [vmem:[#allocation6 + $0x10] sm:$0xff]  ;;  %v74_v9 = vld [vmem:[#allocation6] sm:$0xff] }
  0x13   :  { %102 = vmatpush.msra.mxu0 %v78_v4  ;;  %279 = vmatpush.msra.mxu2 %v78_v4  ;;  %v440_v10 = vld [vmem:[#allocation8] sm:$0x3] }
  0x14   :  { %126 = vmatpush.msra.mxu1 %v77_v2  ;;  %284 = vmatpush.msra.mxu3 %v77_v2  ;;  %v153_v11 = vperm.slane %v440_v10, 1 }
  0x15   :  { %103 = vmatpush.msra.mxu0 %v76_v8  ;;  %280 = vmatpush.msra.mxu2 %v76_v8 }
  0x16   :  { %127 = vmatpush.msra.mxu1 %v75_v5  ;;  %285 = vmatpush.msra.mxu3 %v75_v5 }
  0x17   :  { %274 = vmatmul.msk.f32.vlgmr.msra.gmra.mxu1 %vm82_vm0, %v72_v6  ;;  %275 = vmatmul.msk.f32.vlgmr.msra.gmra.mxu3 %vm82_vm0, %v73_v7 }
  0x18   :  { %104 = vmatpush.msra.mxu0 %v74_v9  ;;  %281 = vmatpush.msra.mxu2 %v74_v9 }
  0x19   :  { %272 = vmatmul.msk.f32.vlgmr.msra.gmra.mxu0 %vm82_vm0, %v72_v6  ;;  %273 = vmatmul.msk.f32.vlgmr.msra.gmra.mxu2 %vm82_vm0, %v73_v7 }
  0x94   :  { %v129_v12 = vpop.f32.mrf.mxu1 }
  0x95   :  { %v443_v13 = vadd.f32 %v153_v11, %v129_v12 }
  0x97   :  { %v162_v14 = vmul.f32 0.70710677, %v443_v13 }
  0x99   :  { %v164_v15 = vmul.f32 %v162_v14, %v162_v14 }
  0x9a   :  { %v132_v16 = vpop.f32.mrf.mxu3 }
  0x9b   :  { %v165_v17 = vmin.f32 %v164_v15, 16.0  ;;  %v446_v18 = vadd.f32 %v153_v11, %v132_v16  ;;  %v152_v16 = vperm.slane %v440_v10, 0 }
  0x9d   :  { %v166_v19 = vmul.f32 2.1237322e-06, %v165_v17  ;;  %v177_v20 = vmul.f32 3.8918573e-05, %v165_v17  ;;  %v449_v21 = vmul.f32 0.70710677, %v446_v18 }
  0x9f   :  { %v167_v22 = vadd.f32 0.00028619796, %v166_v19  ;;  %v178_v23 = vadd.f32 0.001143296, %v177_v20  ;;  %v204_v24 = vmul.f32 %v449_v21, %v449_v21 }
  0xa1   :  { %v168_v25 = vmul.f32 %v167_v22, %v165_v17  ;;  %v179_v26 = vmul.f32 %v178_v23, %v165_v17  ;;  %v205_v27 = vmin.f32 %v204_v24, 16.0  ;;  %v106_v22 = vpop.f32.mrf.mxu0 }
  0xa3   :  { %v180_v28 = vadd.f32 0.014752088, %v179_v26  ;;  %v169_v29 = vadd.f32 0.0036580483, %v168_v25  ;;  %v206_v30 = vmul.f32 2.1237322e-06, %v205_v27  ;;  %v156_v26 = vadd.f32 %v152_v16, %v106_v22 }
  0xa4   :  { %v217_v31 = vmul.f32 3.8918573e-05, %v205_v27  ;;  %v160_v25 = vmul.f32 0.5, %v443_v13 }
  0xa5   :  { %v181_v32 = vmul.f32 %v180_v28, %v165_v17  ;;  %v207_v33 = vadd.f32 0.00028619796, %v206_v30  ;;  %v170_v36 = vmul.f32 %v169_v29, %v165_v17 }
  0xa6   :  { %v218_v34 = vadd.f32 0.001143296, %v217_v31 }
  0xa7   :  { %v182_v35 = vadd.f32 0.112945676, %v181_v32  ;;  %v208_v37 = vmul.f32 %v207_v33, %v205_v27  ;;  %v171_v43 = vadd.f32 0.05243302, %v170_v36  ;;  %v109_v33 = vpop.f32.mrf.mxu2 }
  0xa8   :  { %v219_v38 = vmul.f32 %v218_v34, %v205_v27  ;;  %v158_v36 = vadd.f32 %v152_v16, %v109_v33 }
  0xa9   :  { %v183_v39 = vmul.f32 %v182_v35, %v165_v17  ;;  %v209_v42 = vadd.f32 0.0036580483, %v208_v37  ;;  %v172_v49 = vmul.f32 %v171_v43, %v165_v17  ;;  %v161_v35 = vmul.f32 0.5, %v446_v18 }
  0xaa   :  { %v220_v40 = vadd.f32 0.014752088, %v219_v38 }
  0xab   :  { %v184_v41 = vadd.f32 0.4994258, %v183_v39  ;;  %v210_v48 = vmul.f32 %v209_v42, %v205_v27  ;;  %v173_v53 = vadd.f32 0.18741608, %v172_v49 }
  0xac   :  { %v221_v44 = vmul.f32 %v220_v40, %v205_v27 }
  0xad   :  { %v185_v45 = vmul.f32 %v184_v41, %v165_v17  ;;  %v211_v52 = vadd.f32 0.05243302, %v210_v48  ;;  %v174_v58 = vmul.f32 %v173_v53, %v165_v17 }
  0xae   :  { %v222_v46 = vadd.f32 0.112945676, %v221_v44 }
  0xaf   :  { %v186_v47 = vadd.f32 1.0, %v185_v45  ;;  %v212_v57 = vmul.f32 %v211_v52, %v205_v27  ;;  %v175_v63 = vadd.f32 1.1283791, %v174_v58 }
  0xb0   :  { %v223_v50 = vmul.f32 %v222_v46, %v205_v27 }
  0xb1   :  { %294 = vrcp.f32 %v186_v47  ;;  %v198_v61 = vand.u32 2147483648, %v186_v47  ;;  %v213_v62 = vadd.f32 0.18741608, %v212_v57  ;;  %v196_v1 = vand.u32 2147483647, %v186_v47 }
  0xb2   :  { %v224_v51 = vadd.f32 0.4994258, %v223_v50  ;;  %vm192_vm2 = vweird.f32 %v186_v47  ;;  %v176_v7 = vmul.f32 %v175_v63, %v162_v14 }
  0xb3   :  { %v199_v4 = vor.u32 1.1754944e-38, %v198_v61  ;;  %v214_v5 = vmul.f32 %v213_v62, %v205_v27  ;;  %vm197_vm4 = vcmp.eq.f32.partialorder %v196_v1, 8.507059e+37 }
  0xb4   :  { %v225_v54 = vmul.f32 %v224_v51, %v205_v27 }
  0xb5   :  { %v215_v17 = vadd.f32 1.1283791, %v214_v5 }
  0xb6   :  { %v226_v55 = vadd.f32 1.0, %v225_v54 }
  0xb7   :  { %v295_v56 = vpop.eup %294  ;;  %v216_v28 = vmul.f32 %v215_v17, %v449_v21 }
  0xb8   :  { %v188_v59 = vmul.f32 %v295_v56, %v186_v47  ;;  %296 = vrcp.f32 %v226_v55  ;;  %vm193_vm1 = vweird.f32 %v295_v56  ;;  %v238_v15 = vand.u32 2147483648, %v226_v55 }
  0xb9   :  { %vm194_vm3 = vmor %vm192_vm2, %vm193_vm1  ;;  %v236_v20 = vand.u32 2147483647, %v226_v55  ;;  %vm232_vm6 = vweird.f32 %v226_v55 }
  0xba   :  { %v189_v60 = vsub.f32 1.0, %v188_v59  ;;  %v239_v14 = vor.u32 1.1754944e-38, %v238_v15 }
  0xbb   :  { %vm237_vm8 = vcmp.eq.f32.partialorder %v236_v20, 8.507059e+37 }
  0xbc   :  { %v190_v0 = vmul.f32 %v295_v56, %v189_v60 }
  0xbe   :  { %v297_v2 = vpop.eup %296  ;;  %v191_v3 = vadd.f32 %v295_v56, %v190_v0 }
  0xbf   :  { %v228_v6 = vmul.f32 %v297_v2, %v226_v55  ;;  %vm233_vm5 = vweird.f32 %v297_v2 }
  0xc0   :  { %v195_v8 = vsel %vm194_vm3, %v295_v56, %v191_v3  ;;  %vm234_vm7 = vmor %vm232_vm6, %vm233_vm5 }
  0xc1   :  { %v200_v9 = vsel %vm197_vm4, %v199_v4, %v195_v8  ;;  %v229_v11 = vsub.f32 1.0, %v228_v6 }
  0xc2   :  { %v201_v12 = vmul.f32 %v200_v9, %v176_v7 }
  0xc3   :  { %v230_v19 = vmul.f32 %v297_v2, %v229_v11 }
  0xc4   :  { %v276_v23 = vclamps-f32 %v201_v12, 1.0 }
  0xc5   :  { %v231_v24 = vadd.f32 %v297_v2, %v230_v19 }
  0xc6   :  { %v244_v27 = vadd.f32 1.0, %v276_v23 }
  0xc7   :  { %v235_v29 = vsel %vm234_vm7, %v297_v2, %v231_v24 }
  0xc8   :  { %v240_v30 = vsel %vm237_vm8, %v239_v14, %v235_v29  ;;  %v246_v10 = vmul.f32 %v244_v27, %v160_v25 }
  0xc9   :  { %v241_v31 = vmul.f32 %v240_v30, %v216_v28 }
  0xca   :  { %v248_v32 = vmul.f32 %v246_v10, %v156_v26 }
  0xcb   :  { %v277_v34 = vclamps-f32 %v241_v31, 1.0 }
  0xcc   :  { %250 = vst [vmem:[#allocation9] sm:$0xff] %v248_v32 }
  0xcd   :  { %v245_v37 = vadd.f32 1.0, %v277_v34 }
  0xcf   :  { %v247_v13 = vmul.f32 %v245_v37, %v161_v35 }
  0xd1   :  { %v249_v21 = vmul.f32 %v247_v13, %v158_v36 }
  0xd3   :  { %251 = vst [vmem:[#allocation9 + $0x8] sm:$0xff] %v249_v21 }
  0xd4   :  { %264 = dma.vmem_to_hbm [thread:$0]  %s257_s29, 256, %s259_s5, [#allocation5], %s404_s24, %s404_s24, %s405_s25  }
  0xd5   :  { %398 = dma.done.wait [#allocation5], 256  }
  0xd6   :  { %399 = vsyncadd [#allocation5], 4294967040 }
  0xd7   :  { %269 = vsyncpa [#allocation4], 1 }
  0xd8   :  { %270 = vsyncpa [#allocation7], 1 }
  0xd9   :  { %271 = vsyncpa [#allocation5], 1 }

</bundles_post_ra>
